<compile_context>
chip_gen: v5e
topology: v5e:2x2
jax: 0.10.0
libtpu: 0.0.40
codegen_flags: <defaults>
</compile_context>

<pallas_src>
import jax
import jax.numpy as jnp
from jax.experimental import pallas as pl
from jax.experimental.pallas import tpu as pltpu


def _mlp_kernel(x_ref,
                w1_ref, b1_ref,
                w2_ref, b2_ref,
                w3_ref, b3_ref,
                w4_ref, b4_ref,
                o_ref):
    """One batch tile: features live on sublanes, batch on the lane axis."""
    x = x_ref[...]                                     # (2, T)
    w1 = w1_ref[...]                                   # (32, 2)
    # Layer 1: K=2 contraction -> two VPU broadcast-FMAs instead of an MXU matmul.
    h = w1[:, 0:1] * x[0:1, :] + w1[:, 1:2] * x[1:2, :] + b1_ref[...]
    h = jnp.maximum(h, 0.0)                            # (32, T)
    h = jnp.dot(w2_ref[...], h, preferred_element_type=jnp.float32) + b2_ref[...]
    h = jnp.maximum(h, 0.0)                            # (16, T)
    h = jnp.dot(w3_ref[...], h, preferred_element_type=jnp.float32) + b3_ref[...]
    h = jnp.maximum(h, 0.0)                            # (4, T)
    o = jnp.dot(w4_ref[...], h, preferred_element_type=jnp.float32) + b4_ref[...]
    o_ref[...] = o.astype(o_ref.dtype)                 # (out, T)


def expert_layers_deep_presoftmax(x, params, *, tile_n=512):
    """x: (N, 2) float32.  params: [(w, b)] with w=(out,in), b=(out,1).  Returns (N, out)."""
    (w1, b1), (w2, b2), (w3, b3), (w4, b4) = params
    n = x.shape[0]
    out_dim = w4.shape[0]

    # Pad the batch up to a multiple of the lane tile and transpose so batch is the
    # lane (last) axis: x_t is (2, N_pad).
    n_pad = ((n + tile_n - 1) // tile_n) * tile_n
    x_t = jnp.pad(x.astype(jnp.float32).T, ((0, 0), (0, n_pad - n)))

    grid = (n_pad // tile_n,)

    # x / out stream in batch tiles; weights & biases stay resident (constant index_map).
    x_spec = pl.BlockSpec((2, tile_n), lambda i: (0, i))
    out_spec = pl.BlockSpec((out_dim, tile_n), lambda i: (0, i))
    resident = lambda a: pl.BlockSpec(a.shape, lambda i: (0, 0))
    in_specs = [x_spec] + [resident(a) for a in (w1, b1, w2, b2, w3, b3, w4, b4)]

    # Advisory cost estimate: ~1.3 kFLOP / row, HBM traffic dominated by x + out.
    flops = 2 * (2 * 32 + 32 * 16 + 16 * 4 + 4 * out_dim) * n_pad
    bytes_accessed = 4 * (2 + out_dim) * n_pad + sum(
        4 * a.size for a in (w1, b1, w2, b2, w3, b3, w4, b4))
    cost = pl.CostEstimate(flops=flops, transcendentals=0,
                           bytes_accessed=bytes_accessed)

    out_t = pl.pallas_call(
        _mlp_kernel,
        out_shape=jax.ShapeDtypeStruct((out_dim, n_pad), jnp.float32),
        grid=grid,
        in_specs=in_specs,
        out_specs=out_spec,
        compiler_params=pltpu.CompilerParams(
            dimension_semantics=("parallel",)),
        cost_estimate=cost,
    )(x_t, w1, b1, w2, b2, w3, b3, w4, b4)

    # Slice off the padding and return in the original (batch, features) layout.
    return out_t[:, :n].T


def init_params(key, output):
    """Deterministic init matching nn.Linear's U(-1/sqrt(fan_in), 1/sqrt(fan_in)).

    Weights stored as (out_features, in_features) — PyTorch layout; biases as (out, 1).
    """
    dims = [2, 32, 16, 4, output]
    params = []
    for fan_in, fan_out in zip(dims[:-1], dims[1:]):
        kw, kb, key = jax.random.split(key, 3)
        bound = 1.0 / (fan_in ** 0.5)
        w = jax.random.uniform(kw, (fan_out, fan_in), jnp.float32, -bound, bound)
        b = jax.random.uniform(kb, (fan_out, 1), jnp.float32, -bound, bound)
        params.append((w, b))
    return params


def reference_forward(x, params):
    h = x
    for i, (w, b) in enumerate(params):
        h = h @ w.T + b.reshape(1, -1)
        if i < len(params) - 1:
            h = jnp.maximum(h, 0.0)
    return h


if __name__ == "__main__":
    key = jax.random.PRNGKey(0)
    k_x, k_p = jax.random.split(key)

    output_dim = 4       # `output` arg of the module
    batch = 8            # small, not a tile multiple -> exercises the padding path
    x = jax.random.normal(k_x, (batch, 2), jnp.float32)

    params = init_params(k_p, output_dim)

    out = expert_layers_deep_presoftmax(x, params)
    out = jax.block_until_ready(out)

    ref = reference_forward(x, params)
    assert out.shape == (batch, output_dim), out.shape
    assert jnp.allclose(out, ref, atol=1e-5, rtol=1e-5), "mismatch vs reference"

    print("KERNEL_OK")
</pallas_src>

<mosaic_0001>
module attributes {stable_mosaic.version = 11 : i64} {
  func.func @_mlp_kernel(%arg0: i32, %arg1: memref<2x512xf32, #tpu.memory_space<vmem>>, %arg2: memref<32x2xf32, #tpu.memory_space<vmem>>, %arg3: memref<32x1xf32, #tpu.memory_space<vmem>>, %arg4: memref<16x32xf32, #tpu.memory_space<vmem>>, %arg5: memref<16x1xf32, #tpu.memory_space<vmem>>, %arg6: memref<4x16xf32, #tpu.memory_space<vmem>>, %arg7: memref<4x1xf32, #tpu.memory_space<vmem>>, %arg8: memref<4x4xf32, #tpu.memory_space<vmem>>, %arg9: memref<4x1xf32, #tpu.memory_space<vmem>>, %arg10: memref<4x512xf32, #tpu.memory_space<vmem>>) attributes {dimension_semantics = [#tpu.dimension_semantics<parallel>], iteration_bounds = array<i64: 1>, scalar_prefetch = 0 : i64, scratch_operands = 0 : i64, tpu.core_type = #tpu.core_type<tc>, window_params = [{transform_indices = @transform_0, window_bounds = array<i64: 2, 512>}, {pipeline_mode = #tpu.pipeline_mode<synchronous>, transform_indices = @transform_1, window_bounds = array<i64: 32, 2>}, {pipeline_mode = #tpu.pipeline_mode<synchronous>, transform_indices = @transform_2, window_bounds = array<i64: 32, 1>}, {pipeline_mode = #tpu.pipeline_mode<synchronous>, transform_indices = @transform_3, window_bounds = array<i64: 16, 32>}, {pipeline_mode = #tpu.pipeline_mode<synchronous>, transform_indices = @transform_4, window_bounds = array<i64: 16, 1>}, {pipeline_mode = #tpu.pipeline_mode<synchronous>, transform_indices = @transform_5, window_bounds = array<i64: 4, 16>}, {pipeline_mode = #tpu.pipeline_mode<synchronous>, transform_indices = @transform_6, window_bounds = array<i64: 4, 1>}, {pipeline_mode = #tpu.pipeline_mode<synchronous>, transform_indices = @transform_7, window_bounds = array<i64: 4, 4>}, {pipeline_mode = #tpu.pipeline_mode<synchronous>, transform_indices = @transform_8, window_bounds = array<i64: 4, 1>}, {transform_indices = @transform_9, window_bounds = array<i64: 4, 512>}]} {
    %c0 = arith.constant 0 : index
    %c0_0 = arith.constant 0 : index
    %0 = vector.load %arg1[%c0, %c0_0] : memref<2x512xf32, #tpu.memory_space<vmem>>, vector<2x512xf32>
    %c0_1 = arith.constant 0 : index
    %c0_2 = arith.constant 0 : index
    %1 = vector.load %arg2[%c0_1, %c0_2] : memref<32x2xf32, #tpu.memory_space<vmem>>, vector<32x2xf32>
    %2 = vector.extract_strided_slice %1 {offsets = [0, 0], sizes = [32, 1], strides = [1, 1]} : vector<32x2xf32> to vector<32x1xf32>
    %3 = vector.extract_strided_slice %0 {offsets = [0, 0], sizes = [1, 512], strides = [1, 1]} : vector<2x512xf32> to vector<1x512xf32>
    %4 = vector.broadcast %2 : vector<32x1xf32> to vector<32x512xf32>
    %5 = vector.broadcast %3 : vector<1x512xf32> to vector<32x512xf32>
    %6 = arith.mulf %4, %5 : vector<32x512xf32>
    %7 = vector.extract_strided_slice %1 {offsets = [0, 1], sizes = [32, 1], strides = [1, 1]} : vector<32x2xf32> to vector<32x1xf32>
    %8 = vector.extract_strided_slice %0 {offsets = [1, 0], sizes = [1, 512], strides = [1, 1]} : vector<2x512xf32> to vector<1x512xf32>
    %9 = vector.broadcast %7 : vector<32x1xf32> to vector<32x512xf32>
    %10 = vector.broadcast %8 : vector<1x512xf32> to vector<32x512xf32>
    %11 = arith.mulf %9, %10 : vector<32x512xf32>
    %12 = arith.addf %6, %11 : vector<32x512xf32>
    %c0_3 = arith.constant 0 : index
    %c0_4 = arith.constant 0 : index
    %13 = vector.load %arg3[%c0_3, %c0_4] : memref<32x1xf32, #tpu.memory_space<vmem>>, vector<32x1xf32>
    %14 = vector.broadcast %13 : vector<32x1xf32> to vector<32x512xf32>
    %15 = arith.addf %12, %14 : vector<32x512xf32>
    %cst = arith.constant 0.000000e+00 : f32
    %16 = vector.broadcast %cst : f32 to vector<32x512xf32>
    %17 = arith.maximumf %15, %16 : vector<32x512xf32>
    %c0_5 = arith.constant 0 : index
    %c0_6 = arith.constant 0 : index
    %18 = vector.load %arg4[%c0_5, %c0_6] : memref<16x32xf32, #tpu.memory_space<vmem>>, vector<16x32xf32>
    %cst_7 = arith.constant dense<0.000000e+00> : vector<16x512xf32>
    %19 = tpu.matmul %18, %17, %cst_7 {dimension_numbers = #tpu.dot_dimension_numbers<[1], [0], [0], [1], [0, 0, 1, 1], [], []>} : vector<16x32xf32>, vector<32x512xf32>, vector<16x512xf32> -> vector<16x512xf32>
    %c0_8 = arith.constant 0 : index
    %c0_9 = arith.constant 0 : index
    %20 = vector.load %arg5[%c0_8, %c0_9] : memref<16x1xf32, #tpu.memory_space<vmem>>, vector<16x1xf32>
    %21 = vector.broadcast %20 : vector<16x1xf32> to vector<16x512xf32>
    %22 = arith.addf %19, %21 : vector<16x512xf32>
    %cst_10 = arith.constant 0.000000e+00 : f32
    %23 = vector.broadcast %cst_10 : f32 to vector<16x512xf32>
    %24 = arith.maximumf %22, %23 : vector<16x512xf32>
    %c0_11 = arith.constant 0 : index
    %c0_12 = arith.constant 0 : index
    %25 = vector.load %arg6[%c0_11, %c0_12] : memref<4x16xf32, #tpu.memory_space<vmem>>, vector<4x16xf32>
    %cst_13 = arith.constant dense<0.000000e+00> : vector<4x512xf32>
    %26 = tpu.matmul %25, %24, %cst_13 {dimension_numbers = #tpu.dot_dimension_numbers<[1], [0], [0], [1], [0, 0, 1, 1], [], []>} : vector<4x16xf32>, vector<16x512xf32>, vector<4x512xf32> -> vector<4x512xf32>
    %c0_14 = arith.constant 0 : index
    %c0_15 = arith.constant 0 : index
    %27 = vector.load %arg7[%c0_14, %c0_15] : memref<4x1xf32, #tpu.memory_space<vmem>>, vector<4x1xf32>
    %28 = vector.broadcast %27 : vector<4x1xf32> to vector<4x512xf32>
    %29 = arith.addf %26, %28 : vector<4x512xf32>
    %cst_16 = arith.constant 0.000000e+00 : f32
    %30 = vector.broadcast %cst_16 : f32 to vector<4x512xf32>
    %31 = arith.maximumf %29, %30 : vector<4x512xf32>
    %c0_17 = arith.constant 0 : index
    %c0_18 = arith.constant 0 : index
    %32 = vector.load %arg8[%c0_17, %c0_18] : memref<4x4xf32, #tpu.memory_space<vmem>>, vector<4x4xf32>
    %cst_19 = arith.constant dense<0.000000e+00> : vector<4x512xf32>
    %33 = tpu.matmul %32, %31, %cst_19 {dimension_numbers = #tpu.dot_dimension_numbers<[1], [0], [0], [1], [0, 0, 1, 1], [], []>} : vector<4x4xf32>, vector<4x512xf32>, vector<4x512xf32> -> vector<4x512xf32>
    %c0_20 = arith.constant 0 : index
    %c0_21 = arith.constant 0 : index
    %34 = vector.load %arg9[%c0_20, %c0_21] : memref<4x1xf32, #tpu.memory_space<vmem>>, vector<4x1xf32>
    %35 = vector.broadcast %34 : vector<4x1xf32> to vector<4x512xf32>
    %36 = arith.addf %33, %35 : vector<4x512xf32>
    %c0_22 = arith.constant 0 : index
    %c0_23 = arith.constant 0 : index
    %37 = vector.load %arg10[%c0_22, %c0_23] : memref<4x512xf32, #tpu.memory_space<vmem>>, vector<4x512xf32>
    tpu.vector_store %arg10[%c0_22, %c0_23], %36 {strides = array<i32>} : memref<4x512xf32, #tpu.memory_space<vmem>>, vector<4x512xf32>,
    return
  }
  func.func @transform_0(%arg0: i32) -> (i32, i32) {
    %c0_i32 = arith.constant 0 : i32
    %c0_i32_0 = arith.constant 0 : i32
    return %c0_i32, %arg0 : i32, i32
  }
  func.func @transform_1(%arg0: i32) -> (i32, i32) {
    %c0_i32 = arith.constant 0 : i32
    %c0_i32_0 = arith.constant 0 : i32
    %c0_i32_1 = arith.constant 0 : i32
    return %c0_i32, %c0_i32_0 : i32, i32
  }
  func.func @transform_2(%arg0: i32) -> (i32, i32) {
    %c0_i32 = arith.constant 0 : i32
    %c0_i32_0 = arith.constant 0 : i32
    %c0_i32_1 = arith.constant 0 : i32
    return %c0_i32, %c0_i32_0 : i32, i32
  }
  func.func @transform_3(%arg0: i32) -> (i32, i32) {
    %c0_i32 = arith.constant 0 : i32
    %c0_i32_0 = arith.constant 0 : i32
    %c0_i32_1 = arith.constant 0 : i32
    return %c0_i32, %c0_i32_0 : i32, i32
  }
  func.func @transform_4(%arg0: i32) -> (i32, i32) {
    %c0_i32 = arith.constant 0 : i32
    %c0_i32_0 = arith.constant 0 : i32
    %c0_i32_1 = arith.constant 0 : i32
    return %c0_i32, %c0_i32_0 : i32, i32
  }
  func.func @transform_5(%arg0: i32) -> (i32, i32) {
    %c0_i32 = arith.constant 0 : i32
    %c0_i32_0 = arith.constant 0 : i32
    %c0_i32_1 = arith.constant 0 : i32
    return %c0_i32, %c0_i32_0 : i32, i32
  }
  func.func @transform_6(%arg0: i32) -> (i32, i32) {
    %c0_i32 = arith.constant 0 : i32
    %c0_i32_0 = arith.constant 0 : i32
    %c0_i32_1 = arith.constant 0 : i32
    return %c0_i32, %c0_i32_0 : i32, i32
  }
  func.func @transform_7(%arg0: i32) -> (i32, i32) {
    %c0_i32 = arith.constant 0 : i32
    %c0_i32_0 = arith.constant 0 : i32
    %c0_i32_1 = arith.constant 0 : i32
    return %c0_i32, %c0_i32_0 : i32, i32
  }
  func.func @transform_8(%arg0: i32) -> (i32, i32) {
    %c0_i32 = arith.constant 0 : i32
    %c0_i32_0 = arith.constant 0 : i32
    %c0_i32_1 = arith.constant 0 : i32
    return %c0_i32, %c0_i32_0 : i32, i32
  }
  func.func @transform_9(%arg0: i32) -> (i32, i32) {
    %c0_i32 = arith.constant 0 : i32
    %c0_i32_0 = arith.constant 0 : i32
    return %c0_i32, %arg0 : i32, i32
  }
}

</mosaic_0001>

<bundles_post_ra>
// kernel: tpu_custom_call.1
= control target key start
LH: loop header
LB: loop body
LE: loop exit
PB: predicated region body
PF: predicated region fallthrough
CT: control target
= control target key end

     0   :  { %v609_v2 = vmov 0   ;;  %s732_s0 = inlined_call_operand.vmem [shape: f32[2,512], index: 0, kind: input, shape index: {}]   ;;  %s733_s1 = inlined_call_operand.vmem [shape: f32[32,2], index: 1, kind: input, shape index: {}]   ;;  %s734_s2 = inlined_call_operand.vmem [shape: f32[32,1], index: 2, kind: input, shape index: {}]   ;;  %s735_s3 = inlined_call_operand.vmem [shape: f32[16,32], index: 3, kind: input, shape index: {}]   ;;  %s736_s4 = inlined_call_operand.vmem [shape: f32[16,1], index: 4, kind: input, shape index: {}]   ;;  %s737_s5 = inlined_call_operand.vmem [shape: f32[4,16], index: 5, kind: input, shape index: {}]   ;;  %s738_s6 = inlined_call_operand.vmem [shape: f32[4,1], index: 6, kind: input, shape index: {}]   ;;  %s739_s7 = inlined_call_operand.vmem [shape: f32[4,4], index: 7, kind: input, shape index: {}]   ;;  %s740_s8 = inlined_call_operand.vmem [shape: f32[4,1], index: 8, kind: input, shape index: {}]   ;;  %s741_s9 = inlined_call_operand.hbm [shape: f32[4,512], index: 9, kind: output, shape index: {}]  }
   0x1   :  { %v37_v0 = vld [vmem:[%s733_s1 + $0x18] sm:$0xff]  ;;  %v36_v1 = vld [vmem:[%s733_s1 + $0x10] sm:$0xff]  ;;  %576 = vset.pattern.permute.xlu1 %v609_v2  ;;  %574 = vset.pattern.permute.xlu0 %v609_v2  ;;  %v35_v3 = vld [vmem:[%s733_s1 + $0x8] sm:$0xff] }
   0x2   :  { %55 = vperm.xlu0 %574, %v37_v0   ;;  %50 = vperm.xlu1 %576, %v36_v1  }
   0x3   :  { %578 = vset.pattern.permute.xlu2 %v609_v2 }
   0x4   :  { %14 = vsyncpa [#allocation3], 0  ;;  %45 = vperm.xlu2 %578, %v35_v3   ;;  %v610_v4 = vmov 1   ;;  %v34_v5 = vld [vmem:[%s733_s1] sm:$0xff]  ;;  %v150_v6 = vld [vmem:[%s734_s2 + $0x18] sm:$0xff]  ;;  %vm217_vm0 = vcmask 261120  }
   0x5   :  { %v149_v7 = vld [vmem:[%s734_s2 + $0x10] sm:$0xff]  ;;  %v147_v8 = vld [vmem:[%s734_s2] sm:$0xff]  ;;  %v148_v9 = vld [vmem:[%s734_s2 + $0x8] sm:$0xff]  ;;  %vm331_vm1 = vcmask 130048   ;;  %vm430_vm2 = vcmask 1043456   ;;  %vm426_vm3 = vcmask 31744  }
   0x6   :  { %v206_v10 = vld [vmem:[%s736_s4 + $0x8] sm:$0xff]  ;;  %v205_v11 = vld [vmem:[%s736_s4] sm:$0xff]  ;;  %s542_s17 = sshll.u32 %s741_s9, 4  ;;  %s543_s17 = int_to_ptr.hbm [resolvable:$true] %s542_s17 }
   0x7   :  { %v325_v12 = vld [vmem:[%s738_s6] sm:$0xf] }
   0x8   :  { %v420_v13 = vld [vmem:[%s740_s8] sm:$0xf] }
   0x9   :  { %v33_v17 = vld [vmem:[%s732_s0] sm:$0xff] }
   0xa   :  { %575 = vset.pattern.permute.xlu0 %v610_v4  ;;  %577 = vset.pattern.permute.xlu1 %v610_v4  ;;  %v103_v19 = vperm.slane %v33_v17, 1  ;;  %v104_v20 = vperm.slane %v33_v17, 3  ;;  %v105_v21 = vperm.slane %v33_v17, 5  ;;  %v106_v22 = vperm.slane %v33_v17, 7 }
   0xb   :  { %100 = vperm.xlu0 %575, %v37_v0   ;;  %96 = vperm.xlu1 %577, %v36_v1   ;;  %v59_v23 = vperm.slane %v33_v17, 0  ;;  %v60_v24 = vperm.slane %v33_v17, 2  ;;  %v61_v25 = vperm.slane %v33_v17, 4  ;;  %v62_v26 = vperm.slane %v33_v17, 6 }
   0xc   :  { %579 = vset.pattern.permute.xlu2 %v610_v4  ;;  %v111_v27 = vperm.slane %v103_v19, 1  ;;  %v112_v28 = vperm.slane %v104_v20, 1  ;;  %v113_v29 = vperm.slane %v105_v21, 1  ;;  %v114_v30 = vperm.slane %v106_v22, 1 }
   0xd   :  { %92 = vperm.xlu2 %579, %v35_v3   ;;  %v67_v31 = vperm.slane %v59_v23, 0  ;;  %v68_v32 = vperm.slane %v60_v24, 0  ;;  %v69_v33 = vperm.slane %v61_v25, 0  ;;  %v70_v34 = vperm.slane %v62_v26, 0 }
  0x13   :  { %580 = vset.pattern.permute.xlu1 %v609_v2  ;;  %88 = vperm.xlu0 %575, %v34_v5  }
  0x14   :  { %168 = vperm.xlu1 %580, %v150_v6  }
  0x15   :  { %581 = vset.pattern.permute.xlu2 %v609_v2 }
  0x16   :  { %40 = vperm.xlu2 %581, %v34_v5  }
  0x1b   :  { %582 = vset.pattern.permute.xlu0 %v609_v2 }
  0x1c   :  { %163 = vperm.xlu1 %580, %v149_v7   ;;  %153 = vperm.xlu0 %582, %v147_v8  }
  0x1e   :  { %158 = vperm.xlu2 %581, %v148_v9  }
  0x24   :  { %214 = vperm.xlu1 %580, %v206_v10  }
  0x26   :  { %209 = vperm.xlu2 %581, %v205_v11  }
  0x2c   :  { %328 = vperm.xlu1 %580, %v325_v12  }
  0x2e   :  { %423 = vperm.xlu2 %581, %v420_v13  }
  0x5e   :  { %v46_v14 = vpop.permute.xlu2 %45 }
  0x5f   :  { %v75_v37 = vmul.f32 %v67_v31, %v46_v14  ;;  %v76_v38 = vmul.f32 %v68_v32, %v46_v14  ;;  %v77_v39 = vmul.f32 %v69_v33, %v46_v14  ;;  %v78_v40 = vmul.f32 %v70_v34, %v46_v14 }
  0x67   :  { %v93_v18 = vpop.permute.xlu2 %92 }
  0x68   :  { %v119_v41 = vmul.f32 %v111_v27, %v93_v18  ;;  %v120_v42 = vmul.f32 %v112_v28, %v93_v18  ;;  %v121_v43 = vmul.f32 %v113_v29, %v93_v18  ;;  %v122_v44 = vmul.f32 %v114_v30, %v93_v18 }
  0x6a   :  { %v135_v54 = vadd.f32 %v119_v41, %v75_v37  ;;  %v136_v55 = vadd.f32 %v120_v42, %v76_v38  ;;  %v137_v56 = vadd.f32 %v121_v43, %v77_v39  ;;  %v138_v57 = vadd.f32 %v122_v44, %v78_v40 }
  0x70   :  { %v41_v45 = vpop.permute.xlu2 %40 }
  0x71   :  { %v71_v63 = vmul.f32 %v67_v31, %v41_v45  ;;  %v72_v0 = vmul.f32 %v68_v32, %v41_v45  ;;  %v73_v1 = vmul.f32 %v69_v33, %v41_v45  ;;  %v74_v2 = vmul.f32 %v70_v34, %v41_v45 }
  0x74   :  { %v698_v15 = vpop.permute.xlu1 %50  ;;  %v56_v16 = vpop.permute.xlu0 %55 }
  0x75   :  { %v83_v50 = vmul.f32 %v67_v31, %v56_v16  ;;  %v84_v51 = vmul.f32 %v68_v32, %v56_v16  ;;  %v85_v52 = vmul.f32 %v69_v33, %v56_v16  ;;  %v86_v53 = vmul.f32 %v70_v34, %v56_v16 }
  0x76   :  { %v79_v17 = vmul.f32 %v67_v31, %v698_v15  ;;  %v80_v18 = vmul.f32 %v68_v32, %v698_v15  ;;  %v81_v22 = vmul.f32 %v69_v33, %v698_v15  ;;  %v82_v23 = vmul.f32 %v70_v34, %v698_v15 }
  0x78   :  { %v159_v19 = vpop.permute.xlu2 %158 }
  0x79   :  { %v175_v24 = vadd.f32 %v159_v19, %v135_v54 }
  0x7d   :  { %v101_v35 = vpop.permute.xlu0 %100  ;;  %v97_v36 = vpop.permute.xlu1 %96 }
  0x7e   :  { %v127_v46 = vmul.f32 %v111_v27, %v101_v35  ;;  %v128_v47 = vmul.f32 %v112_v28, %v101_v35  ;;  %v129_v48 = vmul.f32 %v113_v29, %v101_v35  ;;  %v130_v49 = vmul.f32 %v114_v30, %v101_v35 }
  0x7f   :  { %v123_v8 = vmul.f32 %v111_v27, %v97_v36  ;;  %v124_v9 = vmul.f32 %v112_v28, %v97_v36  ;;  %v125_v10 = vmul.f32 %v113_v29, %v97_v36  ;;  %v126_v11 = vmul.f32 %v114_v30, %v97_v36 }
  0x80   :  { %v143_v59 = vadd.f32 %v127_v46, %v83_v50  ;;  %v144_v60 = vadd.f32 %v128_v47, %v84_v51  ;;  %v145_v61 = vadd.f32 %v129_v48, %v85_v52  ;;  %v146_v62 = vadd.f32 %v130_v49, %v86_v53 }
  0x81   :  { %v176_v35 = vadd.f32 %v159_v19, %v136_v55  ;;  %v139_v36 = vadd.f32 %v123_v8, %v79_v17  ;;  %v140_v37 = vadd.f32 %v124_v9, %v80_v18  ;;  %v141_v31 = vadd.f32 %v125_v10, %v81_v22 }
  0x82   :  { %v142_v38 = vadd.f32 %v126_v11, %v82_v23  ;;  %v191_v51 = vmax.f32 %v175_v24, 0.0 }
  0x83   :  { %v192_v52 = vmax.f32 %v176_v35, 0.0 }
  0x85   :  { %v89_v58 = vpop.permute.xlu0 %88 }
  0x86   :  { %v169_v3 = vpop.permute.xlu1 %168  ;;  %v115_v20 = vmul.f32 %v111_v27, %v89_v58  ;;  %v116_v21 = vmul.f32 %v112_v28, %v89_v58  ;;  %v117_v25 = vmul.f32 %v113_v29, %v89_v58  ;;  %v118_v26 = vmul.f32 %v114_v30, %v89_v58 }
  0x87   :  { %v183_v4 = vadd.f32 %v169_v3, %v143_v59  ;;  %v184_v5 = vadd.f32 %v169_v3, %v144_v60  ;;  %v185_v6 = vadd.f32 %v169_v3, %v145_v61  ;;  %v186_v7 = vadd.f32 %v169_v3, %v146_v62  ;;  %v203_v59 = vld [vmem:[%s735_s3] sm:$0xff]  ;;  %v204_v60 = vld [vmem:[%s735_s3 + $0x8] sm:$0xff] }
  0x88   :  { %v177_v27 = vadd.f32 %v159_v19, %v137_v56  ;;  %v178_v28 = vadd.f32 %v159_v19, %v138_v57  ;;  %v131_v40 = vadd.f32 %v115_v20, %v71_v63  ;;  %v132_v33 = vadd.f32 %v116_v21, %v72_v0  ;;  %v210_v63 = vpop.permute.xlu2 %209 }
  0x89   :  { %v199_v12 = vmax.f32 %v183_v4, 0.0  ;;  %v200_v13 = vmax.f32 %v184_v5, 0.0  ;;  %v201_v14 = vmax.f32 %v185_v6, 0.0  ;;  %v202_v16 = vmax.f32 %v186_v7, 0.0 }
  0x8a   :  { %v133_v30 = vadd.f32 %v117_v25, %v73_v1  ;;  %v134_v44 = vadd.f32 %v118_v26, %v74_v2  ;;  %v193_v53 = vmax.f32 %v177_v27, 0.0  ;;  %v194_v54 = vmax.f32 %v178_v28, 0.0 }
  0x8b   :  { %236 = vmatpush.msra.mxu0 %v199_v12  ;;  %259 = vmatpush.msra.mxu1 %v200_v13  ;;  %v324_v13 = vld [vmem:[%s737_s5] sm:$0xf] }
  0x8c   :  { %282 = vmatpush.msra.mxu2 %v201_v14  ;;  %305 = vmatpush.msra.mxu3 %v202_v16 }
  0x8e   :  { %v164_v32 = vpop.permute.xlu1 %163  ;;  %v154_v39 = vpop.permute.xlu0 %153 }
  0x8f   :  { %v179_v41 = vadd.f32 %v164_v32, %v139_v36  ;;  %v180_v15 = vadd.f32 %v164_v32, %v140_v37  ;;  %v181_v34 = vadd.f32 %v164_v32, %v141_v31  ;;  %v182_v42 = vadd.f32 %v164_v32, %v142_v38  ;;  %v419_v32 = vld [vmem:[%s739_s7] sm:$0xf]  ;;  %s611_s7 = smov [#allocation2]  }
  0x90   :  { %v171_v43 = vadd.f32 %v154_v39, %v131_v40  ;;  %v172_v29 = vadd.f32 %v154_v39, %v132_v33  ;;  %v173_v49 = vadd.f32 %v154_v39, %v133_v30  ;;  %v174_v50 = vadd.f32 %v154_v39, %v134_v44  ;;  %s540_s14 = sshll.u32 %s611_s7, 4  ;;  %s541_s14 = int_to_ptr.vmem [resolvable:$true] %s540_s14 }
  0x91   :  { %v195_v45 = vmax.f32 %v179_v41, 0.0  ;;  %v196_v46 = vmax.f32 %v180_v15, 0.0  ;;  %v197_v47 = vmax.f32 %v181_v34, 0.0  ;;  %v198_v48 = vmax.f32 %v182_v42, 0.0  ;;  %v424_v15 = vpop.permute.xlu2 %423 }
  0x92   :  { %v187_v55 = vmax.f32 %v171_v43, 0.0  ;;  %v188_v56 = vmax.f32 %v172_v29, 0.0  ;;  %v189_v57 = vmax.f32 %v173_v49, 0.0  ;;  %v190_v58 = vmax.f32 %v174_v50, 0.0 }
  0x93   :  { %237 = vmatpush.msra.mxu0 %v195_v45  ;;  %260 = vmatpush.msra.mxu1 %v196_v46 }
  0x94   :  { %283 = vmatpush.msra.mxu2 %v197_v47  ;;  %306 = vmatpush.msra.mxu3 %v198_v48 }
  0x95   :  { %238 = vmatpush.msra.mxu0 %v191_v51  ;;  %261 = vmatpush.msra.mxu1 %v192_v52 }
  0x96   :  { %284 = vmatpush.msra.mxu2 %v193_v53  ;;  %307 = vmatpush.msra.mxu3 %v194_v54  ;;  %v215_v0 = vpop.permute.xlu1 %214 }
  0x97   :  { %239 = vmatpush.msra.mxu0 %v187_v55  ;;  %262 = vmatpush.msra.mxu1 %v188_v56 }
  0x98   :  { %285 = vmatpush.msra.mxu2 %v189_v57  ;;  %308 = vmatpush.msra.mxu3 %v190_v58 }
  0x99   :  { %551 = vmatmul.msk.f32.vlgmr.msra.gmra.mxu0 %vm217_vm0, %v203_v59  ;;  %553 = vmatmul.msk.f32.vlgmr.msra.gmra.mxu1 %vm217_vm0, %v203_v59 }
  0x9a   :  { %555 = vmatmul.msk.f32.vlgmr.msra.gmra.mxu2 %vm217_vm0, %v203_v59  ;;  %557 = vmatmul.msk.f32.vlgmr.msra.gmra.mxu3 %vm217_vm0, %v203_v59 }
  0x9e   :  { %v329_v25 = vpop.permute.xlu1 %328 }
  0xa1   :  { %552 = vmatmul.msk.f32.gmra.mxu0 %vm217_vm0, %v204_v60  ;;  %554 = vmatmul.msk.f32.gmra.mxu1 %vm217_vm0, %v204_v60 }
  0xa2   :  { %556 = vmatmul.msk.f32.gmra.mxu2 %vm217_vm0, %v204_v60  ;;  %558 = vmatmul.msk.f32.gmra.mxu3 %vm217_vm0, %v204_v60 }
 0x116   :  { %v241_v61 = vpop.f32.mrf.mxu0  ;;  %v264_v62 = vpop.f32.mrf.mxu1 }
 0x117   :  { %v242_v5 = vadd.f32 %v241_v61, %v210_v63  ;;  %v265_v6 = vadd.f32 %v264_v62, %v210_v63 }
 0x119   :  { %v316_v11 = vmax.f32 %v242_v5, 0.0  ;;  %v317_v12 = vmax.f32 %v265_v6, 0.0 }
 0x11d   :  { %v287_v1 = vpop.f32.mrf.mxu2  ;;  %v310_v2 = vpop.f32.mrf.mxu3 }
 0x11e   :  { %v244_v3 = vpop.f32.mrf.mxu0  ;;  %v267_v4 = vpop.f32.mrf.mxu1  ;;  %v288_v14 = vadd.f32 %v287_v1, %v210_v63  ;;  %v311_v18 = vadd.f32 %v310_v2, %v210_v63 }
 0x11f   :  { %v245_v7 = vadd.f32 %v244_v3, %v215_v0  ;;  %v268_v8 = vadd.f32 %v267_v4, %v215_v0 }
 0x120   :  { %v318_v23 = vmax.f32 %v288_v14, 0.0  ;;  %v319_v24 = vmax.f32 %v311_v18, 0.0 }
 0x121   :  { %v320_v9 = vmax.f32 %v245_v7, 0.0  ;;  %v321_v10 = vmax.f32 %v268_v8, 0.0 }
 0x123   :  { %349 = vmatpush.msrb.mxu0 %v320_v9  ;;  %369 = vmatpush.msrb.mxu1 %v321_v10 }
 0x125   :  { %v290_v16 = vpop.f32.mrf.mxu2  ;;  %v313_v17 = vpop.f32.mrf.mxu3  ;;  %350 = vmatpush.msrb.mxu0 %v316_v11  ;;  %370 = vmatpush.msrb.mxu1 %v317_v12 }
 0x126   :  { %v291_v19 = vadd.f32 %v290_v16, %v215_v0  ;;  %v314_v20 = vadd.f32 %v313_v17, %v215_v0  ;;  %559 = vmatmul.msk.f32.vlgmr.msrb.gmra.mxu0 %vm331_vm1, %v324_v13  ;;  %560 = vmatmul.msk.f32.vlgmr.msrb.gmra.mxu1 %vm331_vm1, %v324_v13 }
 0x128   :  { %v322_v21 = vmax.f32 %v291_v19, 0.0  ;;  %v323_v22 = vmax.f32 %v314_v20, 0.0 }
 0x12a   :  { %389 = vmatpush.msrb.mxu2 %v322_v21  ;;  %409 = vmatpush.msrb.mxu3 %v323_v22 }
 0x12c   :  { %390 = vmatpush.msrb.mxu2 %v318_v23  ;;  %410 = vmatpush.msrb.mxu3 %v319_v24 }
 0x12d   :  { %561 = vmatmul.msk.f32.vlgmr.msrb.gmra.mxu2 %vm331_vm1, %v324_v13  ;;  %562 = vmatmul.msk.f32.vlgmr.msrb.gmra.mxu3 %vm331_vm1, %v324_v13 }
 0x1a3   :  { %v352_v26 = vpop.f32.mrf.mxu0  ;;  %v372_v35 = vpop.f32.mrf.mxu1 }
 0x1a4   :  { %v353_v36 = vadd.f32 %v352_v26, %v329_v25  ;;  %v373_v37 = vadd.f32 %v372_v35, %v329_v25 }
 0x1a6   :  { %v415_v31 = vmax.f32 %v353_v36, 0.0  ;;  %v416_v38 = vmax.f32 %v373_v37, 0.0 }
 0x1a8   :  { %563 = vmatpush.msk.msra.mxu0 %vm430_vm2, %v415_v31  ;;  %565 = vmatpush.msk.msra.mxu1 %vm430_vm2, %v416_v38 }
 0x1a9   :  { %564 = vmatmul.msk.f32.vlgmr.msra.gmra.mxu0 %vm426_vm3, %v419_v32  ;;  %566 = vmatmul.msk.f32.vlgmr.msra.gmra.mxu1 %vm426_vm3, %v419_v32 }
 0x1b0   :  { %v392_v39 = vpop.f32.mrf.mxu2  ;;  %v412_v27 = vpop.f32.mrf.mxu3 }
 0x1b1   :  { %v393_v28 = vadd.f32 %v392_v39, %v329_v25  ;;  %v413_v40 = vadd.f32 %v412_v27, %v329_v25 }
 0x1b3   :  { %v417_v33 = vmax.f32 %v393_v28, 0.0  ;;  %v418_v41 = vmax.f32 %v413_v40, 0.0 }
 0x1b5   :  { %567 = vmatpush.msk.msra.mxu2 %vm430_vm2, %v417_v33  ;;  %569 = vmatpush.msk.msra.mxu3 %vm430_vm2, %v418_v41 }
 0x1b6   :  { %568 = vmatmul.msk.f32.vlgmr.msra.gmra.mxu2 %vm426_vm3, %v419_v32  ;;  %570 = vmatmul.msk.f32.vlgmr.msra.gmra.mxu3 %vm426_vm3, %v419_v32 }
 0x226   :  { %v460_v34 = vpop.f32.mrf.mxu0  ;;  %v480_v42 = vpop.f32.mrf.mxu1 }
 0x227   :  { %v481_v43 = vadd.f32 %v480_v42, %v424_v15  ;;  %v461_v29 = vadd.f32 %v460_v34, %v424_v15 }
 0x229   :  { %v527_v30 = vrot.slane %v481_v43, 4 }
 0x22b   :  { %v529_v44 = vsel %vm430_vm2, %v461_v29, %v527_v30 }
 0x22c   :  { %533 = vst [vmem:[#allocation2] sm:$0xff] %v529_v44 }
 0x239   :  { %v500_v45 = vpop.f32.mrf.mxu2  ;;  %v520_v46 = vpop.f32.mrf.mxu3 }
 0x23a   :  { %v521_v47 = vadd.f32 %v520_v46, %v424_v15  ;;  %v501_v48 = vadd.f32 %v500_v45, %v424_v15 }
 0x23c   :  { %v528_v49 = vrot.slane %v521_v47, 4 }
 0x23e   :  { %v530_v50 = vsel %vm430_vm2, %v501_v48, %v528_v49 }
 0x23f   :  { %534 = vst [vmem:[#allocation2 + $0x8] sm:$0xff] %v530_v50 }
 0x240   :  { %545 = dma.vmem_to_hbm [thread:$0]  %s541_s14, 256, %s543_s17, [#allocation3]  }
 0x241   :  { %607 = dma.done.wait [#allocation3], 256  }
 0x242   :  { %608 = vsyncadd [#allocation3], 4294967040 }
 0x243   :  { %550 = vsyncpa [#allocation3], 1 }

</bundles_post_ra>
